<compile_context>
chip_gen: v7x
topology: tpu7x:2x2x1
jax: 0.10.0
libtpu: 0.0.40
codegen_flags: <defaults>
</compile_context>

<pallas_src>
import numpy as np
import jax
import jax.numpy as jnp
from jax.experimental import pallas as pl
from jax.experimental.pallas import tpu as pltpu

TEMP = 0.1  # temperature from DCL.__init__ default


def _dcl_kernel(z_ref, loss_n_ref, loss_a_ref):
    z = z_ref[...].astype(jnp.float32)               # (Bb, T, D)
    Bb, T, D = z.shape

    # F.normalize(z, p=2, dim=-1) via rsqrt (EUP) + multiply.
    sumsq = jnp.sum(z * z, axis=-1, keepdims=True)
    inv = jax.lax.rsqrt(jnp.maximum(sumsq, 1e-24))   # == 1/max(||z||, 1e-12)
    zn = z * inv

    # Gram matrix on the MXU, scale by 1/temp once on the smaller (Bb,T,T).
    gram = jnp.einsum('btd,bsd->bts', zn, zn,
                      preferred_element_type=jnp.float32)
    sim = gram * (1.0 / TEMP)                        # (Bb, T, T)

    # Only rows 1: (the transformed views) are needed downstream.
    sim_t = sim[:, 1:, :]                            # (Bb, T-1, T)
    exp_t = jnp.exp(sim_t)

    # Off-diagonal row sums. Row r corresponds to view t = r+1, whose diagonal
    # entry sits in column r+1. Explicit mask (cheap VPU select, exact) rather
    # than subtracting exp(1/temp) which would cancel a ~exp(10) term.
    row = jax.lax.broadcasted_iota(jnp.int32, (T - 1, T), 0)
    col = jax.lax.broadcasted_iota(jnp.int32, (T - 1, T), 1)
    offdiag = col != (row + 1)
    trans = jnp.sum(jnp.where(offdiag[None], exp_t, 0.0), axis=-1)  # (Bb, T-1)

    # Positive pair is already in the gram matrix.
    pos = exp_t[:, :, 0]                             # exp(<z_trans, z_ori>/temp)
    log_pos = sim_t[:, :, 0]                         # <z_trans, z_ori>/temp

    K = T - 1
    scale = 1.0 / abs(float(np.log(1.0 / K)))        # trace-time python scalar

    log_trans = jnp.log(trans)
    loss_n = jnp.mean((log_trans - log_pos) * scale, axis=1)               # (Bb,)
    # -log(1 - pos/trans) == log(trans) - log(trans - pos); reuse log_trans.
    loss_a = jnp.mean((log_trans - jnp.log(trans - pos)) * scale, axis=1)  # (Bb,)

    loss_n_ref[...] = loss_n[None, :]                # lane-dense (1, Bb)
    loss_a_ref[...] = loss_a[None, :]


def dcl_pallas(z, block_b=None):
    z = jnp.asarray(z, jnp.float32)
    B, T, D = z.shape

    # Batch block: whole batch for small B; otherwise a multiple-of-128 block
    # (keeps the (1, block_b) output blocks lane-aligned) sized well under
    # v7x's 64 MiB physical / 32 MiB scoped VMEM.
    if block_b is None:
        block_b = 1024 if (B > 1024 and B % 1024 == 0) else B
    block_b = min(block_b, B)
    if B % block_b != 0:
        block_b = B                                   # fall back: single block
    grid = (B // block_b,)

    loss_n, loss_a = pl.pallas_call(
        _dcl_kernel,
        out_shape=(jax.ShapeDtypeStruct((1, B), jnp.float32),
                   jax.ShapeDtypeStruct((1, B), jnp.float32)),
        grid_spec=pltpu.PrefetchScalarGridSpec(
            num_scalar_prefetch=0,
            grid=grid,
            in_specs=[pl.BlockSpec((block_b, T, D), lambda i: (i, 0, 0))],
            out_specs=(pl.BlockSpec((1, block_b), lambda i: (0, i)),
                       pl.BlockSpec((1, block_b), lambda i: (0, i))),
        ),
        compiler_params=pltpu.CompilerParams(
            dimension_semantics=("parallel",),        # shards over 2 TCs on v7x
            vmem_limit_bytes=32 * 1024 * 1024,
        ),
    )(z)
    return loss_n[0], loss_a[0]


def dcl_ref(z, temp=TEMP):
    # Pure-JAX reference mirroring the torch module (sanity check only).
    zn = z / jnp.maximum(jnp.linalg.norm(z, axis=-1, keepdims=True), 1e-12)
    B, T, D = z.shape
    sim = jnp.exp(jnp.einsum('btd,bsd->bts', zn, zn / temp))
    eye = jnp.eye(T, dtype=bool)
    trans = jnp.sum(jnp.where(~eye[None], sim, 0.0), axis=-1)[:, 1:]
    pos = jnp.exp(jnp.sum(zn[:, 1:] * zn[:, :1], axis=-1) / temp)
    scale = 1.0 / abs(float(np.log(1.0 / (T - 1))))
    loss_n = jnp.mean((jnp.log(trans) - jnp.log(pos)) * scale, axis=1)
    loss_a = jnp.mean(-jnp.log(1.0 - pos / trans) * scale, axis=1)
    return loss_n, loss_a


if __name__ == "__main__":
    # Small shape consistent with the module: (batch, num_trans, z_dim).
    B, T, D = 2, 8, 32
    z = jax.random.normal(jax.random.PRNGKey(0), (B, T, D), dtype=jnp.float32)

    loss_n, loss_a = dcl_pallas(z)
    jax.block_until_ready((loss_n, loss_a))
    ref_n, ref_a = dcl_ref(z)
    assert jnp.allclose(loss_n, ref_n, rtol=1e-4, atol=1e-4)
    assert jnp.allclose(loss_a, ref_a, rtol=1e-4, atol=1e-4)

    # Also exercise the pipelined multi-block batch grid (lane-aligned blocks).
    B2 = 256
    z2 = jax.random.normal(jax.random.PRNGKey(1), (B2, T, D), dtype=jnp.float32)
    loss_n2, loss_a2 = dcl_pallas(z2, block_b=128)
    jax.block_until_ready((loss_n2, loss_a2))
    ref_n2, ref_a2 = dcl_ref(z2)
    assert jnp.allclose(loss_n2, ref_n2, rtol=1e-4, atol=1e-4)
    assert jnp.allclose(loss_a2, ref_a2, rtol=1e-4, atol=1e-4)

    print("KERNEL_OK")
</pallas_src>

<mosaic_0001>
module attributes {stable_mosaic.version = 11 : i64} {
  func.func @_dcl_kernel(%arg0: i32, %arg1: memref<2x8x32xf32, #tpu.memory_space<vmem>>, %arg2: memref<1x2xf32, #tpu.memory_space<vmem>>, %arg3: memref<1x2xf32, #tpu.memory_space<vmem>>) attributes {dimension_semantics = [#tpu.dimension_semantics<parallel>], iteration_bounds = array<i64: 1>, scalar_prefetch = 0 : i64, scratch_operands = 0 : i64, tpu.core_type = #tpu.core_type<tc>, window_params = [{transform_indices = @transform_0, window_bounds = array<i64: 2, 8, 32>}, {transform_indices = @transform_1, window_bounds = array<i64: 1, 2>}, {transform_indices = @transform_2, window_bounds = array<i64: 1, 2>}]} {
    %c0 = arith.constant 0 : index
    %c0_0 = arith.constant 0 : index
    %c0_1 = arith.constant 0 : index
    %0 = vector.load %arg1[%c0, %c0_0, %c0_1] : memref<2x8x32xf32, #tpu.memory_space<vmem>>, vector<2x8x32xf32>
    %1 = arith.mulf %0, %0 : vector<2x8x32xf32>
    %cst = arith.constant dense<0.000000e+00> : vector<2x8xf32>
    %2 = vector.multi_reduction <add>, %1, %cst [2] : vector<2x8x32xf32> to vector<2x8xf32>
    %3 = vector.shape_cast %2 : vector<2x8xf32> to vector<2x8x1xf32>
    %cst_2 = arith.constant 1.000000e-24 : f32
    %4 = vector.broadcast %cst_2 : f32 to vector<2x8x1xf32>
    %5 = arith.maximumf %3, %4 : vector<2x8x1xf32>
    %6 = math.rsqrt %5 : vector<2x8x1xf32>
    %7 = vector.broadcast %6 : vector<2x8x1xf32> to vector<2x8x32xf32>
    %8 = arith.mulf %0, %7 : vector<2x8x32xf32>
    "tpu.trace_start"() <{level = 10 : i32, message = "btd,bsd->bts"}> : () -> ()
    %cst_3 = arith.constant dense<0.000000e+00> : vector<2x8x8xf32>
    %9 = tpu.matmul %8, %8, %cst_3 {dimension_numbers = #tpu.dot_dimension_numbers<[2], [2], [1], [1], [0, 0, 0, 1, 1, 1], [0], [0]>} : vector<2x8x32xf32>, vector<2x8x32xf32>, vector<2x8x8xf32> -> vector<2x8x8xf32>
    "tpu.trace_stop"() : () -> ()
    %cst_4 = arith.constant 1.000000e+01 : f32
    %10 = vector.broadcast %cst_4 : f32 to vector<2x8x8xf32>
    %11 = arith.mulf %9, %10 : vector<2x8x8xf32>
    %12 = vector.extract_strided_slice %11 {offsets = [0, 1, 0], sizes = [2, 7, 8], strides = [1, 1, 1]} : vector<2x8x8xf32> to vector<2x7x8xf32>
    %13 = math.exp %12 : vector<2x7x8xf32>
    %14 = tpu.iota {dimensions = array<i32: 0>} : vector<7x8xi32>
    %15 = tpu.iota {dimensions = array<i32: 1>} : vector<7x8xi32>
    %c1_i32 = arith.constant 1 : i32
    %16 = vector.broadcast %c1_i32 : i32 to vector<7x8xi32>
    %17 = arith.addi %14, %16 : vector<7x8xi32>
    %18 = arith.cmpi ne, %15, %17 : vector<7x8xi32>
    %19 = vector.shape_cast %18 : vector<7x8xi1> to vector<1x7x8xi1>
    %cst_5 = arith.constant 0.000000e+00 : f32
    %20 = vector.shape_cast %19 : vector<1x7x8xi1> to vector<1x7x8xi1>
    %21 = vector.broadcast %20 : vector<1x7x8xi1> to vector<2x7x8xi1>
    %22 = vector.broadcast %cst_5 : f32 to vector<2x7x8xf32>
    %23 = arith.select %21, %13, %22 : vector<2x7x8xi1>, vector<2x7x8xf32>
    %cst_6 = arith.constant dense<0.000000e+00> : vector<2x7xf32>
    %24 = vector.multi_reduction <add>, %23, %cst_6 [2] : vector<2x7x8xf32> to vector<2x7xf32>
    %25 = vector.extract_strided_slice %13 {offsets = [0, 0, 0], sizes = [2, 7, 1], strides = [1, 1, 1]} : vector<2x7x8xf32> to vector<2x7x1xf32>
    %26 = vector.shape_cast %25 : vector<2x7x1xf32> to vector<2x7xf32>
    %27 = vector.extract_strided_slice %12 {offsets = [0, 0, 0], sizes = [2, 7, 1], strides = [1, 1, 1]} : vector<2x7x8xf32> to vector<2x7x1xf32>
    %28 = vector.shape_cast %27 : vector<2x7x1xf32> to vector<2x7xf32>
    %29 = math.log %24 : vector<2x7xf32>
    %30 = arith.subf %29, %28 : vector<2x7xf32>
    %cst_7 = arith.constant 0.513898313 : f32
    %31 = vector.broadcast %cst_7 : f32 to vector<2x7xf32>
    %32 = arith.mulf %30, %31 : vector<2x7xf32>
    %cst_8 = arith.constant dense<0.000000e+00> : vector<2xf32>
    %33 = vector.multi_reduction <add>, %32, %cst_8 [1] : vector<2x7xf32> to vector<2xf32>
    %cst_9 = arith.constant 7.000000e+00 : f32
    %34 = vector.broadcast %cst_9 : f32 to vector<2xf32>
    %35 = arith.divf %33, %34 : vector<2xf32>
    %36 = arith.subf %24, %26 : vector<2x7xf32>
    %37 = math.log %36 : vector<2x7xf32>
    %38 = arith.subf %29, %37 : vector<2x7xf32>
    %cst_10 = arith.constant 0.513898313 : f32
    %39 = vector.broadcast %cst_10 : f32 to vector<2x7xf32>
    %40 = arith.mulf %38, %39 : vector<2x7xf32>
    %cst_11 = arith.constant dense<0.000000e+00> : vector<2xf32>
    %41 = vector.multi_reduction <add>, %40, %cst_11 [1] : vector<2x7xf32> to vector<2xf32>
    %cst_12 = arith.constant 7.000000e+00 : f32
    %42 = vector.broadcast %cst_12 : f32 to vector<2xf32>
    %43 = arith.divf %41, %42 : vector<2xf32>
    %44 = vector.shape_cast %35 : vector<2xf32> to vector<1x2xf32>
    %c0_13 = arith.constant 0 : index
    %c0_14 = arith.constant 0 : index
    %45 = vector.load %arg2[%c0_13, %c0_14] : memref<1x2xf32, #tpu.memory_space<vmem>>, vector<1x2xf32>
    tpu.vector_store %arg2[%c0_13, %c0_14], %44 {strides = array<i32>} : memref<1x2xf32, #tpu.memory_space<vmem>>, vector<1x2xf32>,
    %46 = vector.shape_cast %43 : vector<2xf32> to vector<1x2xf32>
    %c0_15 = arith.constant 0 : index
    %c0_16 = arith.constant 0 : index
    %47 = vector.load %arg3[%c0_15, %c0_16] : memref<1x2xf32, #tpu.memory_space<vmem>>, vector<1x2xf32>
    tpu.vector_store %arg3[%c0_15, %c0_16], %46 {strides = array<i32>} : memref<1x2xf32, #tpu.memory_space<vmem>>, vector<1x2xf32>,
    return
  }
  func.func @transform_0(%arg0: i32) -> (i32, i32, i32) {
    %c0_i32 = arith.constant 0 : i32
    %c0_i32_0 = arith.constant 0 : i32
    %c0_i32_1 = arith.constant 0 : i32
    return %arg0, %c0_i32, %c0_i32_0 : i32, i32, i32
  }
  func.func @transform_1(%arg0: i32) -> (i32, i32) {
    %c0_i32 = arith.constant 0 : i32
    %c0_i32_0 = arith.constant 0 : i32
    return %c0_i32, %arg0 : i32, i32
  }
  func.func @transform_2(%arg0: i32) -> (i32, i32) {
    %c0_i32 = arith.constant 0 : i32
    %c0_i32_0 = arith.constant 0 : i32
    return %c0_i32, %arg0 : i32, i32
  }
}

</mosaic_0001>

<bundles_post_ra>
// kernel: tpu_custom_call.1
= control target key start
LH: loop header
LB: loop body
LE: loop exit
PB: predicated region body
PF: predicated region fallthrough
CT: control target
= control target key end

     0   :  { %8 = vsyncpa [#allocation3], 0  ;;  %s524_s0 = inlined_call_operand.hbm [shape: f32[2,8,32], index: 0, kind: input, shape index: {}]   ;;  %s525_s1 = inlined_call_operand.hbm [shape: f32[1,2], index: 1, kind: output, shape index: {0}]   ;;  %s526_s2 = inlined_call_operand.hbm [shape: f32[1,2], index: 2, kind: output, shape index: {1}]  }
   0x1   :  { %9 = vsyncpa [#allocation4], 0 }
   0x2   :  { %10 = vsyncpa [#allocation7], 0  ;;  %s449_s9 = smov [#allocation2]   ;;  %s377_s13 = scalar_lea.hbm %s524_s0, 256 }
   0x3   :  { %s16_s10 = sshll.u32 %s449_s9, 4  ;;  %p378_p0 = scmp.ne.s32.totalorder %s524_s0, %s377_s13  ;;  %s17_s10 = int_to_ptr.vmem [resolvable:$true] %s16_s10 }
   0x4   :  { %p381_p1 = scmp.lt.u32.totalorder %s377_s13, %s524_s0 }
   0x6   :  { %p383_p2 = pnand %p381_p1, %p378_p0 }
   0x8   :  { %386 = shalt.err (!%p383_p2)
}
   0x9   :  { %s387_s18 = scalar_lea.vmem %s17_s10, 256  ;;  %p392_p4 = scmp.lt.s32.totalorder %s17_s10, %s17_s10 }
   0xa   :  { %p388_p3 = scmp.ne.s32.totalorder %s17_s10, %s387_s18  ;;  %p393_p5 = scmp.lt.s32.totalorder %s387_s18, %s387_s18 }
   0xc   :  { %p394_p6 = por %p393_p5, %p392_p4 }
   0xe   :  { %p395_p7 = pnand %p394_p6, %p388_p3 }
  0x10   :  { %398 = shalt.err (!%p395_p7)
}
  0x11   :  { %s450_s19 = smov 128   ;;  %s451_s20 = smov 8  }
  0x12   :  { %22 = dma.hbm_to_vmem [thread:$0]  %s524_s0, 256, %s17_s10, [#allocation3], %s450_s19, %s450_s19, %s451_s20  }
  0x13   :  { %443 = dma.done.wait [#allocation3], 256  }
  0x14   :  { %444 = vsyncadd [#allocation3], 4294967040  ;;  %v26_v0 = vld [vmem:[#allocation2] sm:$0xff]  ;;  %vm30_vm0 = vcmask 261120   ;;  %v27_v1 = vld [vmem:[#allocation2 + $0x8] sm:$0xff]  ;;  %v452_v6 = vmov 0.0   ;;  %v195_v15 = vlaneseq }
  0x15   :  { %v28_v2 = vmul.f32 %v26_v0, %v26_v0  ;;  %v29_v3 = vmul.f32 %v27_v1, %v27_v1  ;;  %341 = vmatprep.subr.mxu0 %v452_v6  ;;  %346 = vmatprep.subr.mxu1 %v452_v6  ;;  %vm453_vm1 = vmmov 0   ;;  %vm211_vm3 = vcmask 63488   ;;  %s455_s0 = smov [#allocation5]  }
  0x16   :  { %343 = vmatprep.mubr.msk.f32.mxu0 %vm453_vm1, %v452_v6  ;;  %348 = vmatprep.mubr.msk.f32.mxu1 %vm453_vm1, %v452_v6  ;;  %v196_v16 = vshrl.u32 %v195_v15, 7  ;;  %v198_v17 = vand.u32 127, %v195_v15  ;;  %v454_v36 = vmov 0   ;;  %vm248_vm4 = vcmask 1041409   ;;  %s310_s23 = sshll.u32 %s455_s0, 4  ;;  %s311_s23 = int_to_ptr.vmem [resolvable:$true] %s310_s23 }
  0x17   :  { %v31_v4 = vsel %vm30_vm0, %v28_v2, 0.0  ;;  %v34_v5 = vsel %vm30_vm0, %v29_v3, 0.0  ;;  %359 = vset.pattern.permute.xlu0 %v454_v36  ;;  %360 = vset.pattern.permute.xlu1 %v454_v36  ;;  %vm251_vm5 = vcmask 50176   ;;  %vm295_vm6 = vcmask 8192   ;;  %s399_s24 = scalar_lea.vmem %s311_s23, 16  ;;  %s403_s25 = scalar_lea.vmem %s311_s23, 32 }
  0x18   :  { %32 = vadd.xlane.f32.xlu0 %v31_v4  ;;  %v490_v18 = vsub.s32 %v198_v17, %v196_v16  ;;  %v199_v27 = vadd.s32 1, %v196_v16  ;;  %p400_p8 = scmp.ne.s32.totalorder %s311_s23, %s399_s24  ;;  %p404_p9 = scmp.lt.s32.totalorder %s311_s23, %s311_s23 }
  0x19   :  { %p405_p10 = scmp.lt.s32.totalorder %s403_s25, %s399_s24 }
  0x1a   :  { %vm200_vm2 = vcmp.ne.s32.totalorder %v198_v17, %v199_v27 }
  0x1b   :  { %p406_p11 = por %p405_p10, %p404_p9 }
  0x1c   :  { %35 = vadd.xlane.f32.xlu0 %v34_v5 }
  0x1d   :  { %p407_p12 = pnand %p406_p11, %p400_p8 }
  0xa5   :  { %v33_v7 = vpop.xlane.xlu0 %32 }
  0xa6   :  { %v37_v8 = vmax.f32 %v33_v7, 1e-24 }
  0xa8   :  { %361 = vrsqrt.f32 %v37_v8 }
  0xa9   :  { %v36_v9 = vpop.xlane.xlu0 %35 }
  0xaa   :  { %v38_v10 = vmax.f32 %v36_v9, 1e-24 }
  0xac   :  { %363 = vrsqrt.f32 %v38_v10 }
  0xb2   :  { %v362_v11 = vpop.eup %361 }
  0xb3   :  { %v41_v12 = vmul.f32 %v362_v11, %v26_v0 }
  0xb5   :  { %342 = vmatpush3.xpose.msk.msra.mxu0 %vm30_vm0, %v41_v12 }
  0xb6   :  { %v364_v13 = vpop.eup %363 }
  0xb7   :  { %v42_v14 = vmul.f32 %v364_v13, %v27_v1 }
  0xb8   :  { %344 = vmatmul.mubr.msk.f32.vlgmr.msra.gmra.mrb[0].mxu0 %vm30_vm0, %v41_v12 }
  0xb9   :  { %347 = vmatpush3.xpose.msk.msra.mxu1 %vm30_vm0, %v42_v14 }
  0xbc   :  { %349 = vmatmul.mubr.msk.f32.vlgmr.msra.gmra.mrb[0].mxu1 %vm30_vm0, %v42_v14 }
 0x18b   :  { %v112_v19 = vpop.f32.mrb[0].mxu0 }
 0x18c   :  { %v189_v20 = vmul.f32 10.0, %v112_v19  ;;  %v345_v21 = vpop.f32.mrb[1].mxu0 }
 0x18e   :  { %v191_v22 = vmul.f32 1.442695, %v189_v20  ;;  %v224_v42 = vrot.slane %v189_v20, 1 }
 0x18f   :  { %v185_v23 = vpop.f32.mrb[0].mxu1 }
 0x190   :  { %365 = vpow2.f32 %v191_v22  ;;  %v190_v24 = vmul.f32 10.0, %v185_v23  ;;  %v350_v25 = vpop.f32.mrb[1].mxu1 }
 0x192   :  { %v193_v26 = vmul.f32 1.442695, %v190_v24  ;;  %v225_v47 = vrot.slane %v190_v24, 1 }
 0x194   :  { %367 = vpow2.f32 %v193_v26 }
 0x19a   :  { %v366_v28 = vpop.eup %365 }
 0x19b   :  { %v205_v29 = vrot.slane %v366_v28, 1 }
 0x19d   :  { %v209_v30 = vsel %vm200_vm2, %v205_v29, 0.0 }
 0x19e   :  { %v368_v31 = vpop.eup %367  ;;  %v212_v32 = vsel %vm211_vm3, %v209_v30, 0.0 }
 0x19f   :  { %213 = vadd.xlane.f32.xlu1 %v212_v32  ;;  %v206_v33 = vrot.slane %v368_v31, 1 }
 0x1a1   :  { %v210_v34 = vsel %vm200_vm2, %v206_v33, 0.0 }
 0x1a2   :  { %v215_v35 = vsel %vm211_vm3, %v210_v34, 0.0 }
 0x1a3   :  { %216 = vadd.xlane.f32.xlu1 %v215_v35 }
 0x22c   :  { %v214_v37 = vpop.xlane.xlu1 %213 }
 0x22d   :  { %369 = vlog2.f32 %v214_v37  ;;  %v257_v38 = vsub.f32 %v214_v37, %v205_v29 }
 0x22f   :  { %371 = vlog2.f32 %v257_v38 }
 0x230   :  { %v217_v39 = vpop.xlane.xlu1 %216 }
 0x231   :  { %373 = vlog2.f32 %v217_v39  ;;  %v258_v40 = vsub.f32 %v217_v39, %v206_v33 }
 0x233   :  { %375 = vlog2.f32 %v258_v40 }
 0x237   :  { %v370_v41 = vpop.eup %369 }
 0x238   :  { %v219_v43 = vmul.f32 0.6931472, %v370_v41 }
 0x239   :  { %v372_v44 = vpop.eup %371 }
 0x23a   :  { %v228_v45 = vsub.f32 %v219_v43, %v224_v42  ;;  %v260_v48 = vmul.f32 0.6931472, %v372_v44 }
 0x23b   :  { %v374_v46 = vpop.eup %373 }
 0x23c   :  { %v221_v49 = vmul.f32 0.6931472, %v374_v46  ;;  %v230_v50 = vmul.f32 0.5138983, %v228_v45  ;;  %v263_v55 = vsub.f32 %v219_v43, %v260_v48 }
 0x23d   :  { %v376_v51 = vpop.eup %375 }
 0x23e   :  { %235 = vperm.xlu0 %359, %v230_v50   ;;  %v229_v52 = vsub.f32 %v221_v49, %v225_v47  ;;  %v262_v53 = vmul.f32 0.6931472, %v376_v51  ;;  %v265_v56 = vmul.f32 0.5138983, %v263_v55 }
 0x240   :  { %v231_v54 = vmul.f32 0.5138983, %v229_v52  ;;  %v264_v57 = vsub.f32 %v221_v49, %v262_v53 }
 0x242   :  { %238 = vperm.xlu1 %360, %v231_v54   ;;  %v266_v58 = vmul.f32 0.5138983, %v264_v57 }
 0x246   :  { %270 = vperm.xlu1 %360, %v265_v56  }
 0x24a   :  { %273 = vperm.xlu1 %360, %v266_v58  }
 0x2bd   :  { %v236_v59 = vpop.permute.xlu0 %235 }
 0x2be   :  { %v243_v61 = vrot.slane %v236_v59, %v490_v18 }
 0x2c1   :  { %v239_v60 = vpop.permute.xlu1 %238 }
 0x2c2   :  { %v247_v62 = vrot.slane %v239_v60, %v490_v18 }
 0x2c4   :  { %v249_v63 = vsel %vm248_vm4, %v247_v62, %v243_v61 }
 0x2c5   :  { %v271_v0 = vpop.permute.xlu1 %270  ;;  %v252_v1 = vsel %vm251_vm5, %v249_v63, 0.0 }
 0x2c6   :  { %253 = vadd.xlane.f32.xlu1 %v252_v1  ;;  %v278_v3 = vrot.slane %v271_v0, %v490_v18 }
 0x2c9   :  { %v274_v2 = vpop.permute.xlu1 %273 }
 0x2ca   :  { %v282_v4 = vrot.slane %v274_v2, %v490_v18 }
 0x2cc   :  { %v283_v5 = vsel %vm248_vm4, %v282_v4, %v278_v3 }
 0x2cd   :  { %v285_v6 = vsel %vm251_vm5, %v283_v5, 0.0 }
 0x2ce   :  { %286 = vadd.xlane.f32.xlu0 %v285_v6 }
 0x353   :  { %v254_v7 = vpop.xlane.xlu1 %253 }
 0x354   :  { %v256_v8 = vmul.f32 0.14285715, %v254_v7 }
 0x356   :  { %v293_v9 = vrot.slane %v256_v8, %v490_v18 }
 0x358   :  { %296 = vst.msk [vmem:[#allocation5] sm:$0x1] %vm295_vm6, %v293_v9 }
 0x359   :  { %410 = shalt.err (!%p407_p12)
}
 0x35a   :  { %s411_s28 = scalar_lea.hbm %s525_s1, 16 }
 0x35b   :  { %p412_p13 = scmp.ne.s32.totalorder %s525_s1, %s411_s28  ;;  %p415_p0 = scmp.lt.u32.totalorder %s411_s28, %s525_s1 }
 0x35d   :  { %p417_p1 = pnand %p415_p0, %p412_p13 }
 0x35f   :  { %420 = shalt.err (!%p417_p1)
}
 0x360   :  { %313 = dma.vmem_to_hbm [thread:$0]  %s311_s23, 16, %s525_s1, [#allocation4]   ;;  %v287_v10 = vpop.xlane.xlu0 %286 }
 0x361   :  { %s456_s7 = smov [#allocation6]   ;;  %v288_v11 = vmul.f32 0.14285715, %v287_v10 }
 0x362   :  { %s320_s8 = sshll.u32 %s456_s7, 4  ;;  %s321_s8 = int_to_ptr.vmem [resolvable:$true] %s320_s8 }
 0x363   :  { %v301_v12 = vrot.slane %v288_v11, %v490_v18  ;;  %s421_s9 = scalar_lea.vmem %s321_s8, 16  ;;  %s425_s10 = scalar_lea.vmem %s321_s8, 32 }
 0x364   :  { %p422_p2 = scmp.ne.s32.totalorder %s321_s8, %s421_s9  ;;  %p426_p3 = scmp.lt.s32.totalorder %s321_s8, %s321_s8 }
 0x365   :  { %303 = vst.msk [vmem:[#allocation6] sm:$0x1] %vm295_vm6, %v301_v12  ;;  %p427_p4 = scmp.lt.s32.totalorder %s425_s10, %s421_s9 }
 0x367   :  { %p428_p5 = por %p427_p4, %p426_p3 }
 0x369   :  { %p429_p6 = pnand %p428_p5, %p422_p2 }
 0x36b   :  { %432 = shalt.err (!%p429_p6)
}
 0x36c   :  { %s433_s1 = scalar_lea.hbm %s526_s2, 16 }
 0x36d   :  { %p434_p7 = scmp.ne.s32.totalorder %s526_s2, %s433_s1  ;;  %p437_p8 = scmp.lt.u32.totalorder %s433_s1, %s526_s2 }
 0x36f   :  { %p439_p9 = pnand %p437_p8, %p434_p7 }
 0x371   :  { %442 = shalt.err (!%p439_p9)
}
 0x372   :  { %323 = dma.vmem_to_hbm [thread:$0]  %s321_s8, 16, %s526_s2, [#allocation7]  }
 0x373   :  { %445 = dma.done.wait [#allocation4], 16  }
 0x374   :  { %446 = vsyncadd [#allocation4], 4294967280 }
 0x375   :  { %447 = dma.done.wait [#allocation7], 16  }
 0x376   :  { %448 = vsyncadd [#allocation7], 4294967280 }
 0x377   :  { %330 = vsyncpa [#allocation3], 1 }
 0x378   :  { %331 = vsyncpa [#allocation4], 1 }
 0x379   :  { %332 = vsyncpa [#allocation7], 1 }

</bundles_post_ra>
